<compile_context>
chip_gen: v7x
topology: tpu7x:2x2x1
jax: 0.10.0
libtpu: 0.0.40
codegen_flags: <defaults>
</compile_context>

<pallas_src>
import functools

import jax
import jax.numpy as jnp
from jax.experimental import pallas as pl
from jax.experimental.pallas import tpu as pltpu


# ---------------------------------------------------------------------------
# Kernels
# ---------------------------------------------------------------------------

def _sa_flat_kernel(x_ref, pool_ref, exp_ref, w1_ref, b1_ref, w2_ref, b2_ref,
                    o_ref, *, inv_f):
    """x block: (bt, C*F) in native dtype; lane axis = C*F (dense loads/stores)."""
    xdt = x_ref.dtype
    # Feature mean per channel via MXU: (bt, C*F) @ (C*F, C) -> (bt, C).
    # pool_ref is 0/1 (exact in any dtype) so the big tile is never upcast;
    # accumulation is f32 via preferred_element_type.
    pooled = jnp.dot(x_ref[...], pool_ref[...],
                     preferred_element_type=jnp.float32) * inv_f
    # Tiny MLP in f32: fc1 + tanh (EUP) + fc2.
    h = jnp.tanh(jnp.dot(pooled, w1_ref[...],
                         preferred_element_type=jnp.float32) + b1_ref[...])
    m = jnp.dot(h, w2_ref[...],
                preferred_element_type=jnp.float32) + b2_ref[...]
    # Broadcast each channel's multiplier across its F columns with the
    # transposed 0/1 matrix: (bt, C) @ (C, C*F) -> (bt, C*F), lane-dense.
    mult = jnp.dot(m.astype(xdt), exp_ref[...],
                   preferred_element_type=jnp.float32)
    # Bulk elementwise multiply in x's native dtype; x_ref is re-read here so
    # the tile is not kept live across the reduce->fc1->tanh->fc2 chain.
    o_ref[...] = x_ref[...] * mult.astype(xdt)


def _sa_3d_kernel(x_ref, w1_ref, b1_ref, w2_ref, b2_ref, o_ref):
    """x block: (bt, C, F); used when F % 128 == 0 and C >= sublane packing."""
    # AvgPool over features with f32 accumulation (each block carries full F).
    pooled = jnp.mean(x_ref[...], axis=-1, dtype=jnp.float32)          # (bt, C)
    h = jnp.tanh(jnp.dot(pooled, w1_ref[...],
                         preferred_element_type=jnp.float32) + b1_ref[...])
    m = jnp.dot(h, w2_ref[...],
                preferred_element_type=jnp.float32) + b2_ref[...]
    # Re-read x_ref for the multiply (short live ranges); stays in native dtype.
    o_ref[...] = x_ref[...] * m.astype(o_ref.dtype)[:, :, None]


# ---------------------------------------------------------------------------
# Wrapper
# ---------------------------------------------------------------------------

def _cdiv(a, b):
    return (a + b - 1) // b


def _round_up(a, m):
    return _cdiv(a, m) * m


def _vmem_limits():
    """Returns (physical VMEM bytes, scoped vmem_limit_bytes to request)."""
    try:
        cap = int(pltpu.get_tpu_info().vmem_capacity_bytes)
    except Exception:
        cap = 64 * 1024 * 1024      # conservative default: v7x has 64 MiB / TC
    # Leave headroom below physical for Mosaic internal scratch: v5e/v6e
    # (128 MiB) -> ~96 MiB scoped, v7x (64 MiB) -> ~48 MiB scoped.
    limit = max(32 * 1024 * 1024, min(cap * 3 // 4, 96 * 1024 * 1024))
    return cap, limit


def _pick_batch_tile(B, per_row_live_bytes, avail_bytes, sub, requested):
    """Batch rows per block: a multiple of `sub`, or the full batch."""
    if requested is not None:
        rows = int(requested)
    else:
        # Biggest tile that fits the VMEM budget (double-buffered in/out + f32
        # temporaries).  NOTE: for gigantic C*F rows the minimal tile may still
        # exceed the budget; see the TODO about an F-tiled two-pass variant.
        rows = max(sub, avail_bytes // max(per_row_live_bytes, 1))
        # Keep >=4 (at least >=2) grid steps when B allows, so both v7x
        # TensorCores get work and the DMA pipeline has steps to overlap.
        if B >= 4 * sub:
            rows = min(rows, _round_up(_cdiv(B, 4), sub))
        elif B >= 2 * sub:
            rows = min(rows, _round_up(_cdiv(B, 2), sub))
    if rows >= B:
        return B                      # single block; block dims == array dims is legal
    return max(sub, (rows // sub) * sub)


def spatial_attention(x, fc1_w, fc1_b, fc2_w, fc2_b, *,
                      batch_tile=None, donate_x=False):
    """Pallas-TPU forward of SpatialAttention.

    x: (B, C, F); fc1_w: (H, C); fc1_b: (H,); fc2_w: (C, H); fc2_b: (C,)
    (PyTorch nn.Linear layout).  Returns (B, C, F) in x.dtype.
    """
    B, C, F = x.shape
    H = fc1_w.shape[0]
    itemsize = jnp.dtype(x.dtype).itemsize
    sub = 8 * (4 // itemsize) if itemsize in (1, 2, 4) else 8   # sublane packing

    _, vmem_limit = _vmem_limits()

    # Weights in (in, out) order for in-kernel matmuls; biases as 2-D rows.
    # They are tiny and resident (constant index_maps), kept in f32.
    w1 = jnp.asarray(fc1_w, jnp.float32).T            # (C, H)
    b1 = jnp.asarray(fc1_b, jnp.float32).reshape(1, H)
    w2 = jnp.asarray(fc2_w, jnp.float32).T            # (H, C)
    b2 = jnp.asarray(fc2_b, jnp.float32).reshape(1, C)
    weight_bytes = 2 * (w1.size + b1.size + w2.size + b2.size) * 4  # ~double-buffered

    cf = C * F
    # Layout choice: the flat (B, C*F) view fixes both lane density (small /
    # unaligned F -> no masked vst) and sublane density (small C); the natural
    # 3-D view needs no helper matrices when F is already 128-aligned and C
    # fills the sublanes.
    mats_bytes = 2 * (2 * cf * C) * itemsize           # P + E, ~double-buffered
    use_flat = (F % 128 != 0) or (C < sub)
    if use_flat and mats_bytes > vmem_limit // 4:
        # TODO(synk): for very large C*F with unaligned F, add an F-tiled
        # two-pass variant (partial-sum accumulation over an "arbitrary" F axis
        # followed by a multiply pass) instead of falling back to the 3-D path.
        use_flat = False

    row_bytes = cf * itemsize                          # one batch row of x
    cost = pl.CostEstimate(
        flops=2 * B * cf + 4 * B * C * H + (4 * B * cf * C if use_flat else 0),
        transcendentals=B * H,
        bytes_accessed=2 * B * cf * itemsize + weight_bytes // 2
                       + (mats_bytes // 2 if use_flat else 0),
    )
    io_alias = {0: 0} if donate_x else {}
    cparams = pltpu.CompilerParams(
        dimension_semantics=("parallel",),             # shard batch tiles across TCs
        vmem_limit_bytes=int(vmem_limit),
    )

    if use_flat:
        # ---- flat (B, C*F) path: lane-dense along C*F --------------------
        x2d = x.reshape(B, cf)                         # row-major view, free
        chan = jnp.arange(cf, dtype=jnp.int32) // F    # channel of each column
        pool_mat = (chan[:, None] ==
                    jnp.arange(C, dtype=jnp.int32)[None, :]).astype(x.dtype)  # (C*F, C)
        exp_mat = pool_mat.T                                                  # (C, C*F)

        # Live VMEM per batch row: x in + out double-buffered (2x2) plus the
        # f32 multiplier matmul result; budget excludes resident weights/mats.
        per_row_live = 4 * row_bytes + 4 * cf
        avail = max(vmem_limit - weight_bytes - mats_bytes - (4 << 20),
                    per_row_live)
        bt = _pick_batch_tile(B, per_row_live, avail, sub, batch_tile)
        grid = (_cdiv(B, bt),)

        out2d = pl.pallas_call(
            functools.partial(_sa_flat_kernel, inv_f=1.0 / F),
            out_shape=jax.ShapeDtypeStruct((B, cf), x.dtype),
            grid=grid,
            in_specs=[
                pl.BlockSpec((bt, cf), lambda i: (i, 0)),   # x tile (lane-dense)
                pl.BlockSpec((cf, C), lambda i: (0, 0)),    # P     (resident)
                pl.BlockSpec((C, cf), lambda i: (0, 0)),    # E=P.T (resident)
                pl.BlockSpec((C, H), lambda i: (0, 0)),     # w1
                pl.BlockSpec((1, H), lambda i: (0, 0)),     # b1
                pl.BlockSpec((H, C), lambda i: (0, 0)),     # w2
                pl.BlockSpec((1, C), lambda i: (0, 0)),     # b2
            ],
            out_specs=pl.BlockSpec((bt, cf), lambda i: (i, 0)),
            compiler_params=cparams,
            cost_estimate=cost,
            input_output_aliases=io_alias,
        )(x2d, pool_mat, exp_mat, w1, b1, w2, b2)
        return out2d.reshape(B, C, F)

    # ---- natural 3-D path: F % 128 == 0 and C >= sublane packing ----------
    per_row_live = 4 * row_bytes + 4 * C               # in/out dbuf + f32 m row
    avail = max(vmem_limit - weight_bytes - (4 << 20), per_row_live)
    bt = _pick_batch_tile(B, per_row_live, avail, 1, batch_tile)
    grid = (_cdiv(B, bt),)

    return pl.pallas_call(
        _sa_3d_kernel,
        out_shape=jax.ShapeDtypeStruct((B, C, F), x.dtype),
        grid=grid,
        in_specs=[
            pl.BlockSpec((bt, C, F), lambda i: (i, 0, 0)),  # last 2 dims = full (C,F)
            pl.BlockSpec((C, H), lambda i: (0, 0)),
            pl.BlockSpec((1, H), lambda i: (0, 0)),
            pl.BlockSpec((H, C), lambda i: (0, 0)),
            pl.BlockSpec((1, C), lambda i: (0, 0)),
        ],
        out_specs=pl.BlockSpec((bt, C, F), lambda i: (i, 0, 0)),
        compiler_params=cparams,
        cost_estimate=cost,
        input_output_aliases=io_alias,
    )(x, w1, b1, w2, b2)


# ---------------------------------------------------------------------------
# Reference & demo
# ---------------------------------------------------------------------------

def spatial_attention_ref(x, fc1_w, fc1_b, fc2_w, fc2_b):
    hp = jax.lax.Precision.HIGHEST
    pooled = jnp.mean(x, axis=-1)
    h = jnp.tanh(jnp.dot(pooled, fc1_w.T, precision=hp) + fc1_b)
    m = jnp.dot(h, fc2_w.T, precision=hp) + fc2_b
    return x * m[:, :, None]


if __name__ == "__main__":
    key = jax.random.PRNGKey(0)
    kx, k1, k2, k3, k4, kx2 = jax.random.split(key, 6)

    # Case 1: small, non-128-aligned feature dim -> flat (B, C*F) lane-dense path.
    B, C, F, H = 16, 4, 16, 32   # batch, num_channels, num_features, hidden_size
    x = jax.random.normal(kx, (B, C, F), dtype=jnp.float32)
    fc1_w = jax.random.normal(k1, (H, C), dtype=jnp.float32) * 0.1
    fc1_b = jax.random.normal(k2, (H,), dtype=jnp.float32) * 0.1
    fc2_w = jax.random.normal(k3, (C, H), dtype=jnp.float32) * 0.1
    fc2_b = jax.random.normal(k4, (C,), dtype=jnp.float32) * 0.1

    y = jax.block_until_ready(spatial_attention(x, fc1_w, fc1_b, fc2_w, fc2_b))
    y_ref = spatial_attention_ref(x, fc1_w, fc1_b, fc2_w, fc2_b)
    assert y.shape == (B, C, F)
    assert jnp.allclose(y, y_ref, atol=1e-3, rtol=1e-3), \
        float(jnp.max(jnp.abs(y - y_ref)))

    # Case 2: 128-aligned features, C >= sublane packing -> natural 3-D path.
    B2, C2, F2 = 16, 8, 128
    x2 = jax.random.normal(kx2, (B2, C2, F2), dtype=jnp.float32)
    fc1_w2 = jax.random.normal(k1, (H, C2), dtype=jnp.float32) * 0.1
    fc2_w2 = jax.random.normal(k3, (C2, H), dtype=jnp.float32) * 0.1
    fc2_b2 = jax.random.normal(k4, (C2,), dtype=jnp.float32) * 0.1

    y2 = jax.block_until_ready(
        spatial_attention(x2, fc1_w2, fc1_b, fc2_w2, fc2_b2))
    y2_ref = spatial_attention_ref(x2, fc1_w2, fc1_b, fc2_w2, fc2_b2)
    assert y2.shape == (B2, C2, F2)
    assert jnp.allclose(y2, y2_ref, atol=1e-3, rtol=1e-3), \
        float(jnp.max(jnp.abs(y2 - y2_ref)))

    print("KERNEL_OK")
</pallas_src>

<mosaic_0001>
module attributes {stable_mosaic.version = 11 : i64} {
  func.func @_sa_flat_kernel(%arg0: i32, %arg1: memref<8x64xf32, #tpu.memory_space<vmem>>, %arg2: memref<64x4xf32, #tpu.memory_space<vmem>>, %arg3: memref<4x64xf32, #tpu.memory_space<vmem>>, %arg4: memref<4x32xf32, #tpu.memory_space<vmem>>, %arg5: memref<1x32xf32, #tpu.memory_space<vmem>>, %arg6: memref<32x4xf32, #tpu.memory_space<vmem>>, %arg7: memref<1x4xf32, #tpu.memory_space<vmem>>, %arg8: memref<8x64xf32, #tpu.memory_space<vmem>>) attributes {dimension_semantics = [#tpu.dimension_semantics<parallel>], iteration_bounds = array<i64: 2>, scalar_prefetch = 0 : i64, scratch_operands = 0 : i64, tpu.core_type = #tpu.core_type<tc>, window_params = [{transform_indices = @transform_0, window_bounds = array<i64: 8, 64>}, {pipeline_mode = #tpu.pipeline_mode<synchronous>, transform_indices = @transform_1, window_bounds = array<i64: 64, 4>}, {pipeline_mode = #tpu.pipeline_mode<synchronous>, transform_indices = @transform_2, window_bounds = array<i64: 4, 64>}, {pipeline_mode = #tpu.pipeline_mode<synchronous>, transform_indices = @transform_3, window_bounds = array<i64: 4, 32>}, {pipeline_mode = #tpu.pipeline_mode<synchronous>, transform_indices = @transform_4, window_bounds = array<i64: 1, 32>}, {pipeline_mode = #tpu.pipeline_mode<synchronous>, transform_indices = @transform_5, window_bounds = array<i64: 32, 4>}, {pipeline_mode = #tpu.pipeline_mode<synchronous>, transform_indices = @transform_6, window_bounds = array<i64: 1, 4>}, {transform_indices = @transform_7, window_bounds = array<i64: 8, 64>}]} {
    %c0 = arith.constant 0 : index
    %c0_0 = arith.constant 0 : index
    %0 = vector.load %arg1[%c0, %c0_0] : memref<8x64xf32, #tpu.memory_space<vmem>>, vector<8x64xf32>
    %c0_1 = arith.constant 0 : index
    %c0_2 = arith.constant 0 : index
    %1 = vector.load %arg2[%c0_1, %c0_2] : memref<64x4xf32, #tpu.memory_space<vmem>>, vector<64x4xf32>
    %cst = arith.constant dense<0.000000e+00> : vector<8x4xf32>
    %2 = tpu.matmul %0, %1, %cst {dimension_numbers = #tpu.dot_dimension_numbers<[1], [0], [0], [1], [0, 0, 1, 1], [], []>} : vector<8x64xf32>, vector<64x4xf32>, vector<8x4xf32> -> vector<8x4xf32>
    %cst_3 = arith.constant 6.250000e-02 : f32
    %3 = vector.broadcast %cst_3 : f32 to vector<8x4xf32>
    %4 = arith.mulf %2, %3 : vector<8x4xf32>
    %c0_4 = arith.constant 0 : index
    %c0_5 = arith.constant 0 : index
    %5 = vector.load %arg4[%c0_4, %c0_5] : memref<4x32xf32, #tpu.memory_space<vmem>>, vector<4x32xf32>
    %cst_6 = arith.constant dense<0.000000e+00> : vector<8x32xf32>
    %6 = tpu.matmul %4, %5, %cst_6 {dimension_numbers = #tpu.dot_dimension_numbers<[1], [0], [0], [1], [0, 0, 1, 1], [], []>} : vector<8x4xf32>, vector<4x32xf32>, vector<8x32xf32> -> vector<8x32xf32>
    %c0_7 = arith.constant 0 : index
    %c0_8 = arith.constant 0 : index
    %7 = vector.load %arg5[%c0_7, %c0_8] : memref<1x32xf32, #tpu.memory_space<vmem>>, vector<1x32xf32>
    %8 = vector.broadcast %7 : vector<1x32xf32> to vector<8x32xf32>
    %9 = arith.addf %6, %8 : vector<8x32xf32>
    %10 = math.tanh %9 : vector<8x32xf32>
    %c0_9 = arith.constant 0 : index
    %c0_10 = arith.constant 0 : index
    %11 = vector.load %arg6[%c0_9, %c0_10] : memref<32x4xf32, #tpu.memory_space<vmem>>, vector<32x4xf32>
    %cst_11 = arith.constant dense<0.000000e+00> : vector<8x4xf32>
    %12 = tpu.matmul %10, %11, %cst_11 {dimension_numbers = #tpu.dot_dimension_numbers<[1], [0], [0], [1], [0, 0, 1, 1], [], []>} : vector<8x32xf32>, vector<32x4xf32>, vector<8x4xf32> -> vector<8x4xf32>
    %c0_12 = arith.constant 0 : index
    %c0_13 = arith.constant 0 : index
    %13 = vector.load %arg7[%c0_12, %c0_13] : memref<1x4xf32, #tpu.memory_space<vmem>>, vector<1x4xf32>
    %14 = vector.broadcast %13 : vector<1x4xf32> to vector<8x4xf32>
    %15 = arith.addf %12, %14 : vector<8x4xf32>
    %c0_14 = arith.constant 0 : index
    %c0_15 = arith.constant 0 : index
    %16 = vector.load %arg3[%c0_14, %c0_15] : memref<4x64xf32, #tpu.memory_space<vmem>>, vector<4x64xf32>
    %cst_16 = arith.constant dense<0.000000e+00> : vector<8x64xf32>
    %17 = tpu.matmul %15, %16, %cst_16 {dimension_numbers = #tpu.dot_dimension_numbers<[1], [0], [0], [1], [0, 0, 1, 1], [], []>} : vector<8x4xf32>, vector<4x64xf32>, vector<8x64xf32> -> vector<8x64xf32>
    %c0_17 = arith.constant 0 : index
    %c0_18 = arith.constant 0 : index
    %18 = vector.load %arg1[%c0_17, %c0_18] : memref<8x64xf32, #tpu.memory_space<vmem>>, vector<8x64xf32>
    %19 = arith.mulf %18, %17 : vector<8x64xf32>
    %c0_19 = arith.constant 0 : index
    %c0_20 = arith.constant 0 : index
    %20 = vector.load %arg8[%c0_19, %c0_20] : memref<8x64xf32, #tpu.memory_space<vmem>>, vector<8x64xf32>
    tpu.vector_store %arg8[%c0_19, %c0_20], %19 {strides = array<i32>} : memref<8x64xf32, #tpu.memory_space<vmem>>, vector<8x64xf32>,
    return
  }
  func.func @transform_0(%arg0: i32) -> (i32, i32) {
    %c0_i32 = arith.constant 0 : i32
    %c0_i32_0 = arith.constant 0 : i32
    return %arg0, %c0_i32 : i32, i32
  }
  func.func @transform_1(%arg0: i32) -> (i32, i32) {
    %c0_i32 = arith.constant 0 : i32
    %c0_i32_0 = arith.constant 0 : i32
    %c0_i32_1 = arith.constant 0 : i32
    return %c0_i32, %c0_i32_0 : i32, i32
  }
  func.func @transform_2(%arg0: i32) -> (i32, i32) {
    %c0_i32 = arith.constant 0 : i32
    %c0_i32_0 = arith.constant 0 : i32
    %c0_i32_1 = arith.constant 0 : i32
    return %c0_i32, %c0_i32_0 : i32, i32
  }
  func.func @transform_3(%arg0: i32) -> (i32, i32) {
    %c0_i32 = arith.constant 0 : i32
    %c0_i32_0 = arith.constant 0 : i32
    %c0_i32_1 = arith.constant 0 : i32
    return %c0_i32, %c0_i32_0 : i32, i32
  }
  func.func @transform_4(%arg0: i32) -> (i32, i32) {
    %c0_i32 = arith.constant 0 : i32
    %c0_i32_0 = arith.constant 0 : i32
    %c0_i32_1 = arith.constant 0 : i32
    return %c0_i32, %c0_i32_0 : i32, i32
  }
  func.func @transform_5(%arg0: i32) -> (i32, i32) {
    %c0_i32 = arith.constant 0 : i32
    %c0_i32_0 = arith.constant 0 : i32
    %c0_i32_1 = arith.constant 0 : i32
    return %c0_i32, %c0_i32_0 : i32, i32
  }
  func.func @transform_6(%arg0: i32) -> (i32, i32) {
    %c0_i32 = arith.constant 0 : i32
    %c0_i32_0 = arith.constant 0 : i32
    %c0_i32_1 = arith.constant 0 : i32
    return %c0_i32, %c0_i32_0 : i32, i32
  }
  func.func @transform_7(%arg0: i32) -> (i32, i32) {
    %c0_i32 = arith.constant 0 : i32
    %c0_i32_0 = arith.constant 0 : i32
    return %arg0, %c0_i32 : i32, i32
  }
}

</mosaic_0001>

<bundles_post_ra>
// kernel: tpu_custom_call.1
= control target key start
LH: loop header
LB: loop body
LE: loop exit
PB: predicated region body
PF: predicated region fallthrough
CT: control target
= control target key end

     0   :  { %12 = vsyncpa [#allocation3], 0  ;;  %s1086_s0 = inlined_call_operand.vmem [shape: f32[16,64], index: 0, kind: input, shape index: {}]   ;;  %s1087_s1 = inlined_call_operand.vmem [shape: f32[64,4], index: 1, kind: input, shape index: {}]   ;;  %s1088_s2 = inlined_call_operand.vmem [shape: f32[4,64], index: 2, kind: input, shape index: {}]   ;;  %s1089_s3 = inlined_call_operand.vmem [shape: f32[4,32], index: 3, kind: input, shape index: {}]   ;;  %s1090_s4 = inlined_call_operand.vmem [shape: f32[1,32], index: 4, kind: input, shape index: {}]   ;;  %s1091_s5 = inlined_call_operand.vmem [shape: f32[32,4], index: 5, kind: input, shape index: {}]   ;;  %s1092_s6 = inlined_call_operand.vmem [shape: f32[1,4], index: 6, kind: input, shape index: {}]   ;;  %s1093_s7 = inlined_call_operand.hbm [shape: f32[16,64], index: 7, kind: output, shape index: {}]  }
   0x1   :  { %14 = vsyncpa [#allocation3 + $0x1], 0  ;;  %s928_s24 = smov 0   ;;  %s930_s25 = smov 0  }
   0x2   :  { %s932_s26 = smov 0   ;;  %s934_s27 = smov 0  }
   0x3 LB: > { %s949_s28 = sadd.s32 4294967295, %s882_s27   ;;  %s682_s29 = sadd.s32 4294967294, %s882_s27   ;;  %s882_s27 = sphi %s934_s27, %s1099_s27   ;;  %s878_s26 = sphi %s932_s26, %s1098_s26   ;;  %s874_s25 = sphi %s930_s25, %s1097_s25   ;;  %s870_s24 = sphi %s928_s24, %s1096_s24  }
   0x4   : > { %s953_s30 = sadd.s32 1, %s882_s27   ;;  %s179_s8 = sadd.s32 1, %s878_s26 }
   0x5   : > { %s176_s9 = ssub.s32 %s882_s27, %s953_s30  ;;  %p189_p0 = scmp.ne.s32.totalorder %s878_s26, %s874_s25 }
   0x6   : > { %p177_p1 = scmp.eq.s32.totalorder %s176_s9, 0  ;;  %p190_p2 = scmp.eq.s32.totalorder %s949_s28, 1 }
   0x7   : > { %p195_p3 = scmp.ne.s32.totalorder %s874_s25, %s870_s24  ;;  %p196_p4 = scmp.eq.s32.totalorder %s682_s29, 1 }
   0x8   : > { %s964_s10 = scalar_select %p177_p1, %s878_s26, %s179_s8  }
   0x9   : > { %p966_p5 = por %p190_p2, %p189_p0  ;;  %p970_p6 = por %p196_p4, %p195_p3 }
   0xa   : > { %p685_p7 = scmp.ge.s32.totalorder %s882_s27, 1  ;;  %p239_p8 = scmp.lt.s32.totalorder %s882_s27, 3 }
   0xc   : > { %p240_p9 = pnand %p685_p7, %p239_p8 }
   0xd   : > { %v275_v0 = vld [vmem:[%s1087_s1] sm:$0xff] (!%p240_p9)  ;;  %v276_v1 = vld [vmem:[%s1087_s1 + $0x8] sm:$0xff] (!%p240_p9)  ;;  %v277_v2 = vld [vmem:[%s1087_s1 + $0x10] sm:$0xff] (!%p240_p9)  ;;  %v884_v3 = vmov (!%p240_p9), 0.0|0.0   ;;  %vm885_vm0 = vmmov (!%p240_p9), 0   ;;  %v886_v6 = vmov (!%p240_p9), 0.0  }
   0xe   : > { %243 = sbr.rel (%p240_p9) target bundleno = 912 (0x390), region = 48  ;;  %758 = vmatprep.subr.bf16.mxu0 (!%p240_p9), %v884_v3  ;;  %v759_v4 = vpack.c.bf16 (!%p240_p9), %v276_v1, %v275_v0  ;;  %v278_v5 = vld [vmem:[%s1087_s1 + $0x18] sm:$0xff] (!%p240_p9)  ;;  %734 = vmatprep.mubr.msk.f32.mxu0 (!%p240_p9), %vm885_vm0, %v886_v6  ;;  %p270_p10 = scmp.lt.s32.totalorder (!%p240_p9), %s949_s28, 1  ;;  %v279_v8 = vld [vmem:[%s1087_s1 + $0x20] sm:$0xff] (!%p240_p9)  ;;  %v280_v9 = vld [vmem:[%s1087_s1 + $0x28] sm:$0xff] (!%p240_p9)  ;;  %vm283_vm1 = vcmask (!%p240_p9), 523264  }
   0xf   : > { %737 = vmatprep.subr.mxu1 (!%p240_p9), %v886_v6  ;;  %739 = vmatprep.mubr.msk.f32.mxu1 (!%p240_p9), %vm885_vm0, %v886_v6  ;;  %v762_v7 = vpack.c.bf16 (!%p240_p9), %v278_v5, %v277_v2  ;;  %v765_v10 = vpack.c.bf16 (!%p240_p9), %v280_v9, %v279_v8  ;;  %v281_v11 = vld [vmem:[%s1087_s1 + $0x30] sm:$0xff] (!%p240_p9)  ;;  %v282_v12 = vld [vmem:[%s1087_s1 + $0x38] sm:$0xff] (!%p240_p9)  ;;  %v358_v15 = vld [vmem:[%s1089_s3] sm:$0xf] (!%p240_p9)  ;;  %vm370_vm2 = vcmask (!%p240_p9), 1043456   ;;  %vm366_vm3 = vcmask (!%p240_p9), 31744  }
  0x10   : > { %760 = vmatpush3.bf16.msra.mxu0 (!%p240_p9), %v759_v4  ;;  %v768_v13 = vpack.c.bf16 (!%p240_p9), %v282_v12, %v281_v11  ;;  %738 = vmatpush3.msk.msra.mxu1 (!%p240_p9), %vm370_vm2, %v358_v15  ;;  %v445_v19 = vld [vmem:[%s1091_s5] sm:$0xff] (!%p240_p9)  ;;  %v446_v20 = vld [vmem:[%s1091_s5 + $0x8] sm:$0xff] (!%p240_p9)  ;;  %v447_v21 = vld [vmem:[%s1091_s5 + $0x10] sm:$0xff] (!%p240_p9)  ;;  %vm456_vm4 = vcmask (!%p240_p9), 261120   ;;  %s267_s22 = sand.u32 (!%p240_p9), 1, %s874_s25   ;;  %s697_s29 = sshll.u32 (!%p240_p9), %s949_s28, 7 }
  0x11   : > { %761 = vmatprep.subr.bf16.mxu0 (!%p240_p9), %v884_v3  ;;  %770 = vmatprep.subr.bf16.mxu1 (!%p240_p9), %v884_v3  ;;  %v771_v22 = vpack.c.bf16 (!%p240_p9), %v446_v20, %v445_v19  ;;  %v448_v23 = vld [vmem:[%s1091_s5 + $0x18] sm:$0xff] (!%p240_p9)  ;;  %v689_v25 = vld [vmem:[%s1090_s4] ss:$0 sm:$0xff] (!%p240_p9)  ;;  %s686_s23 = sshll.u32 (!%p240_p9), %s267_s22, 3  ;;  %s1043_s15 = scalar_lea.hbm (!%p240_p9), %s1093_s7, %s697_s29 }
  0x12   : > { %v774_v24 = vpack.c.bf16 (!%p240_p9), %v448_v23, %v447_v21  ;;  %v530_v29 = vld [vmem:[%s1088_s2] sm:$0xf] (!%p240_p9) }
  0x13   : > { %v692_v31 = vld [vmem:[%s1092_s6] ss:$0 sm:$0xff] (!%p240_p9) }
  0x14   : > { %763 = vmatpush3.bf16.msra.mxu0 (!%p240_p9), %v762_v7 }
  0x15   : > { %s271_s8 = scalar_select %p270_p10, %s949_s28, 1  ;;  %764 = vmatprep.subr.bf16.mxu0 %v884_v3 }
  0x16   : > { %s887_s28 = smov [#allocation2]  }
  0x17   : > { %s687_s16 = sshll.u32 %s271_s8, 3  ;;  %s269_s8 = scalar_lea.vmem [#allocation2], %s686_s23 }
  0x18   : > { %766 = vmatpush3.bf16.msra.mxu0 %v765_v10  ;;  %s273_s19 = scalar_lea.vmem %s1086_s0, %s687_s16  ;;  %s623_s9 = sshll.u32 %s269_s8, 4  ;;  %s1045_s9 = int_to_ptr.vmem [resolvable:$true] %s623_s9 }
  0x19   : > { %767 = vmatprep.subr.bf16.mxu0 %v884_v3  ;;  %v274_v14 = vld [vmem:[%s273_s19] sm:$0xff]  ;;  %s610_s16 = scalar_lea.sflag [#allocation3], %s267_s22  ;;  %s820_s17 = scalar_lea.vmem %s1045_s9, 128 }
  0x1a   : > { %p821_p11 = scmp.ne.s32.totalorder %s1045_s9, %s820_s17  ;;  %s824_s18 = sshll.u32 %s887_s28, 4  ;;  %s825_s18 = int_to_ptr.vmem [resolvable:$false] %s824_s18 }
  0x1b   : > { %s826_s19 = scalar_lea.vmem %s825_s18, 256  ;;  %p827_p0 = scmp.lt.s32.totalorder %s1045_s9, %s825_s18 }
  0x1c   : > { %769 = vmatpush3.bf16.msra.mxu0 %v768_v13  ;;  %p822_p12 = pnand %p821_p11, %p966_p5  ;;  %p828_p1 = scmp.lt.s32.totalorder %s826_s19, %s820_s17 }
  0x1e   : > { %p823_p13 = pneg %p822_p12  ;;  %p829_p2 = por %p828_p1, %p827_p0 }
  0x1f   : > { %735 = vmatmul.mubr.msk.f32.vlgmr.msra.gmra.mrb[0].mxu0 %vm283_vm1, %v274_v14 }
  0x20   : > { %p830_p3 = pnand %p829_p2, %p823_p13 }
  0xf2   : > { %v353_v16 = vpop.f32.mrb[0].mxu0 }
  0xf3   : > { %v357_v17 = vmul.f32 0.0625, %v353_v16  ;;  %v736_v18 = vpop.f32.mrb[1].mxu0 }
  0xf5   : > { %740 = vmatmul.mubr.msk.f32.vlgmr.msra.gmra.mrb[0].mxu1 %vm366_vm3, %v357_v17 }
  0xf6   : > { %750 = vmatprep.mubr.msk.f32.mxu1 %vm885_vm0, %v886_v6  ;;  %772 = vmatpush3.bf16.msra.mxu1 %v771_v22 }
  0xf7   : > { %773 = vmatprep.subr.bf16.mxu1 %v884_v3 }
  0xfa   : > { %775 = vmatpush3.bf16.msra.mxu1 %v774_v24 }
  0xfb   : > { %753 = vmatprep.subr.mxu1 %v886_v6 }
 0x1c8   : > { %v440_v26 = vpop.f32.mrb[0].mxu1 }
 0x1c9   : > { %v441_v27 = vadd.f32 %v689_v25, %v440_v26  ;;  %v741_v28 = vpop.f32.mrb[1].mxu1 }
 0x1cb   : > { %818 = vtanh.f32 %v441_v27 }
 0x1d5   : > { %v819_v30 = vpop.eup %818 }
 0x1d6   : > { %751 = vmatmul.mubr.msk.f32.vlgmr.msra.gmra.mrb[2].mxu1 %vm456_vm4, %v819_v30 }
 0x1d7   : > { %754 = vmatpush3.msk.msra.mxu1 %vm370_vm2, %v530_v29  ;;  %755 = vmatprep.mubr.msk.f32.mxu1 %vm885_vm0, %v886_v6 }
 0x2a9   : > { %v526_v32 = vpop.f32.mrb[2].mxu1 }
 0x2aa   : > { %v527_v33 = vadd.f32 %v692_v31, %v526_v32  ;;  %v752_v34 = vpop.f32.mrb[3].mxu1 }
 0x2ac   : > { %756 = vmatmul.mubr.msk.f32.vlgmr.msra.gmra.mrb[4].mxu1 %vm366_vm3, %v527_v33 }
 0x37f   : > { %v603_v35 = vpop.f32.mrb[4].mxu1 }
 0x380   : > { %v607_v36 = vmul.f32 %v603_v35, %v274_v14  ;;  %v757_v37 = vpop.f32.mrb[5].mxu1 }
 0x382   : > { %608 = vst.msk [vmem:[%s269_s8] sm:$0xff] %vm283_vm1, %v607_v36 }
 0x383   : > { %833 = shalt.err (!%p830_p3)
}
 0x384   : > { %s834_s20 = scalar_lea.hbm %s1043_s15, 128  ;;  %s838_s23 = scalar_lea.hbm %s1093_s7, 256 }
 0x385   : > { %p835_p4 = scmp.ne.s32.totalorder %s1043_s15, %s834_s20  ;;  %p839_p9 = scmp.lt.u32.totalorder %s1043_s15, %s1093_s7 }
 0x386   : > { %p840_p10 = scmp.lt.u32.totalorder %s838_s23, %s834_s20  ;;  %p842_p12 = scmp.lt.u32.totalorder %s834_s20, %s1043_s15 }
 0x387   : > { %p836_p7 = pnand %p835_p4, %p966_p5 }
 0x388   : > { %p841_p11 = por %p840_p10, %p839_p9 }
 0x389   : > { %p837_p8 = pneg %p836_p7 }
 0x38a   : > { %p843_p13 = por %p842_p12, %p841_p11 }
 0x38c   : > { %p844_p0 = pnand %p843_p13, %p837_p8 }
 0x38e   : > { %847 = shalt.err (!%p844_p0)
}
 0x38f   : > { %776 = dma.vmem_to_hbm [thread:$0]  (%p966_p5), %s1045_s9, 128, %s1043_s15, %s610_s16  }
 0x390 PF: > { %p782_p1 = scmp.ge.s32.totalorder %s882_s27, 2  ;;  %s635_s13 = sand.u32 1, %s870_s24  }
 0x391   : > { %s636_s14 = scalar_lea.sflag [#allocation3], %s635_s13 }
 0x392   : > { %p779_p2 = pnand %p782_p1, %p970_p6 }
 0x394   : > { %865 = dma.done.wait (!%p779_p2), %s636_s14, 128  }
 0x395   : > { %867 = vsyncadd (!%p779_p2), %s636_s14, 4294967168  ;;  %p17_p3 = scmp.ge.s32.totalorder %s953_s30, 4   ;;  %s1096_s24 = smov %s874_s25 }
 0x396   : > { %s1097_s25 = smov %s878_s26  ;;  %s1098_s26 = smov %s964_s10 }
 0x397   : > { %s1099_s27 = smov %s953_s30  ;;  %19 = sbr.rel (!%p17_p3) target bundleno = 3 (0x3), region = 83 }
 0x39e   :  { %641 = vsyncpa [#allocation3], 1 }
 0x39f   :  { %643 = vsyncpa [#allocation3 + $0x1], 1 }

</bundles_post_ra>
